<compile_context>
chip_gen: v5e
topology: v5e:2x2
jax: 0.10.0
libtpu: 0.0.40
codegen_flags: <defaults>
</compile_context>

<pallas_src>
import functools

import jax
import jax.numpy as jnp
from jax.experimental import pallas as pl
from jax.experimental.pallas import tpu as pltpu

BN_EPS = 1e-5
MATMUL_DTYPE = jnp.bfloat16   # MXU-native on v5e/v6e/v7x; set to jnp.float32 for exact f32 conv
Y_DTYPE = jnp.bfloat16        # dtype of the conv+bias intermediate round-tripped through HBM


def _vmem_limit_bytes():
    """Generation-aware VMEM budget: ~75% of physical (v5e/v6e ~96 MiB, v7x ~48 MiB)."""
    try:
        cap = int(pltpu.get_tpu_info().vmem_capacity_bytes)
    except Exception:
        cap = 64 * 1024 * 1024  # conservative fallback (v7x per-core physical)
    return max(min(int(cap * 0.75), 100 * 1024 * 1024), 32 * 1024 * 1024)


def _pick_batch_block(n, per_image_bytes, budget_bytes, min_grid=2):
    """Largest divisor of n whose block fits the budget; prefer keeping >= min_grid steps
    so both v7x TensorCores get work and intra-core pipelining stays alive."""
    divisors = [d for d in range(1, n + 1) if n % d == 0]
    fits = [d for d in divisors if d * per_image_bytes <= budget_bytes]
    if not fits:
        return 1
    pref = [d for d in fits if n // d >= min_grid]
    return max(pref) if pref else max(fits)


def _conv_bias_stats_kernel(x_ref, w_ref, b_ref, y_ref, stats_ref, rhs_ref, *,
                            kh, kw, c_in, w_pad, w_out, q, b_blk):
    """Fused conv (one K=KH*KW*C_in matmul per image) + bias; emits y (Y_DTYPE) and masked
    per-channel sum / sum-of-squares partials reduced over the b_blk images of this block.

    x_ref:     (b_blk, C_in, S2)        MATMUL_DTYPE  flattened zero-padded image (+ kw-1 slack)
    w_ref:     (C_out, KH*KW*C_in)      MATMUL_DTYPE  flattened weights
    b_ref:     (C_out, 1)               f32
    y_ref:     (b_blk, C_out, Q)        Y_DTYPE,  Q = H_out * W_pad (junk cols kept)
    stats_ref: (1, C_out, 2)            f32  [:, :, 0]=sum, [:, :, 1]=sum of squares
    rhs_ref:   (KH*KW*C_in, Q)          MATMUL_DTYPE  VMEM scratch holding the shifted copies
    """
    c_out = y_ref.shape[1]
    # Valid-column mask (exclude the W_pad - W_out wrap-around junk columns) — hoisted.
    col = jax.lax.broadcasted_iota(jnp.int32, (1, q), 1)
    valid = ((col % w_pad) < w_out).astype(jnp.float32)

    s1_tot = jnp.zeros((c_out, 1), jnp.float32)
    s2_tot = jnp.zeros((c_out, 1), jnp.float32)
    for b in range(b_blk):                       # static unroll over images in this block
        # Build the (KH*KW*C_in, Q) RHS: one lane-shifted (C_in, Q) copy per kernel tap.
        for i in range(kh):
            for j in range(kw):
                off = i * w_pad + j              # static flat shift of tap (i, j)
                tap = i * kw + j
                rhs_ref[tap * c_in:(tap + 1) * c_in, :] = x_ref[b, :, off:off + q]
        # Single MXU matmul: (C_out, K) @ (K, Q), f32 accumulation, then per-channel bias.
        y = jnp.dot(w_ref[...], rhs_ref[...],
                    preferred_element_type=jnp.float32) + b_ref[...]      # (C_out, Q) f32
        y_ref[b] = y.astype(y_ref.dtype)
        # BN training statistics from the f32 accumulator (pre-downcast), junk cols excluded.
        ym = y * valid
        s1_tot = s1_tot + jnp.sum(ym, axis=1, keepdims=True)
        s2_tot = s2_tot + jnp.sum(ym * ym, axis=1, keepdims=True)
    stats_ref[0, :, 0:1] = s1_tot
    stats_ref[0, :, 1:2] = s2_tot


def _bn_relu_compact_kernel(y_ref, scale_ref, shift_ref, o_ref, *, w_pad, w_out, h_out):
    """Normalize + affine + ReLU and compact away the junk columns (lane-dense output store).

    y_ref:     (b_blk, C_out, Q)              Y_DTYPE   Q = H_out * W_pad
    scale_ref: (C_out, 1) f32                 shift_ref: (C_out, 1) f32
    o_ref:     (b_blk, C_out, H_out*W_out)    f32       compact row-major spatial layout
    """
    c_out = y_ref.shape[1]
    y = y_ref[...].astype(jnp.float32)
    scale = scale_ref[...].reshape(1, c_out, 1)
    shift = shift_ref[...].reshape(1, c_out, 1)
    z = jnp.maximum(y * scale + shift, 0.0)
    # Drop the (W_pad - W_out) junk columns of every output row; one lane-dense store.
    pieces = [z[:, :, r * w_pad:r * w_pad + w_out] for r in range(h_out)]
    o_ref[...] = jnp.concatenate(pieces, axis=-1)


def conv_block_forward(x, weight, bias, gamma, beta, *, stride=1, padding=1):
    """x: (N, C_in, H, W) NCHW f32.  weight: (C_out, C_in, KH, KW).  Returns NCHW f32."""
    if stride != 1:
        # TODO(synk): stride > 1 breaks the flat-spatial shifted-matmul trick; it would need
        # a strided gather or an H/W-blocked variant.
        raise NotImplementedError("conv_block_forward currently supports stride=1 only")

    n, c_in, h, w = x.shape
    c_out, c_in_w, kh, kw = weight.shape
    assert c_in_w == c_in
    h_pad, w_pad = h + 2 * padding, w + 2 * padding
    h_out = h_pad - kh + 1
    w_out = w_pad - kw + 1
    assert h_out > 0 and w_out > 0
    q = h_out * w_pad                  # flat output positions per image (incl. junk columns)
    p_out = h_out * w_out              # compact output positions per image
    s = h_pad * w_pad
    s2 = s + (kw - 1)                  # slack so wrapped junk-column reads stay in-bounds
    k_dim = kh * kw * c_in

    vmem_limit = _vmem_limit_bytes()
    block_budget = vmem_limit // 3     # headroom for double-buffering + weights + scratch
    mm_item = jnp.dtype(MATMUL_DTYPE).itemsize
    y_item = jnp.dtype(Y_DTYPE).itemsize

    # Spatial zero-pad + flatten (cheap, ~1.1x of x; no 9x im2col expansion), cast for MXU.
    x_pad = jnp.pad(x, ((0, 0), (0, 0), (padding, padding), (padding, padding)))
    x_flat = x_pad.reshape(n, c_in, s)
    x_flat = jnp.pad(x_flat, ((0, 0), (0, 0), (0, s2 - s))).astype(MATMUL_DTYPE)

    # OIHW -> (C_out, KH*KW*C_in), row layout matching the shifted-copy RHS.
    w_flat = weight.transpose(0, 2, 3, 1).reshape(c_out, k_dim).astype(MATMUL_DTYPE)
    b2d = bias.reshape(c_out, 1).astype(jnp.float32)

    # ---- pass 1: conv + bias + per-block BN partial sums (grid over image blocks) ----------
    per_img1 = 2 * (c_in * s2 * mm_item + c_out * q * y_item) + k_dim * q * mm_item
    b_blk = _pick_batch_block(n, per_img1, block_budget)
    g1 = n // b_blk
    # TODO(synk): for very large spatial sizes the per-image block should additionally be
    # tiled along H (needs a KH-1 row halo); unnecessary for this module's board sizes.

    kernel1 = functools.partial(_conv_bias_stats_kernel, kh=kh, kw=kw, c_in=c_in,
                                w_pad=w_pad, w_out=w_out, q=q, b_blk=b_blk)
    p1_cost = pl.CostEstimate(
        flops=2 * n * c_out * k_dim * q,
        transcendentals=0,
        bytes_accessed=(n * c_in * s2 * mm_item + c_out * k_dim * mm_item + c_out * 4
                        + n * c_out * q * y_item + g1 * c_out * 2 * 4))
    y_flat, stats = pl.pallas_call(
        kernel1,
        out_shape=(jax.ShapeDtypeStruct((n, c_out, q), Y_DTYPE),
                   jax.ShapeDtypeStruct((g1, c_out, 2), jnp.float32)),
        grid=(g1,),
        in_specs=[pl.BlockSpec((b_blk, c_in, s2), lambda g: (g, 0, 0)),
                  pl.BlockSpec((c_out, k_dim), lambda g: (0, 0)),
                  pl.BlockSpec((c_out, 1), lambda g: (0, 0))],
        out_specs=(pl.BlockSpec((b_blk, c_out, q), lambda g: (g, 0, 0)),
                   pl.BlockSpec((1, c_out, 2), lambda g: (g, 0, 0))),
        scratch_shapes=[pltpu.VMEM((k_dim, q), MATMUL_DTYPE)],
        compiler_params=pltpu.CompilerParams(
            dimension_semantics=("parallel",), vmem_limit_bytes=vmem_limit),
        cost_estimate=p1_cost,
    )(x_flat, w_flat, b2d)

    # ---- combine partials -> BN training-mode statistics (biased variance) -----------------
    # NOTE: one-pass E[y^2] - mean^2 in f32 (sums come from the pre-downcast f32 accumulator).
    count = n * h_out * w_out
    tot = jnp.sum(stats, axis=0)                          # (C_out, 2)
    mean = tot[:, 0] / count
    var = jnp.maximum(tot[:, 1] / count - mean * mean, 0.0)
    inv_std = jax.lax.rsqrt(var + BN_EPS)
    gamma_f = gamma.astype(jnp.float32)
    scale = (gamma_f * inv_std).reshape(c_out, 1)                               # (C_out, 1)
    shift = (beta.astype(jnp.float32) - mean * gamma_f * inv_std).reshape(c_out, 1)
    # TODO(synk): running_mean/running_var buffer updates are stateful side effects that do
    # not change the forward output; not materialized here.

    # ---- pass 2: normalize + ReLU + in-kernel junk-column compaction -----------------------
    per_img2 = 2 * (c_out * q * y_item + c_out * p_out * 4)
    b2_blk = _pick_batch_block(n, per_img2, block_budget)
    g2 = n // b2_blk

    kernel2 = functools.partial(_bn_relu_compact_kernel, w_pad=w_pad, w_out=w_out, h_out=h_out)
    p2_cost = pl.CostEstimate(
        flops=3 * n * c_out * q, transcendentals=0,
        bytes_accessed=n * c_out * q * y_item + n * c_out * p_out * 4 + 2 * c_out * 4)
    out_flat = pl.pallas_call(
        kernel2,
        out_shape=jax.ShapeDtypeStruct((n, c_out, p_out), jnp.float32),
        grid=(g2,),
        in_specs=[pl.BlockSpec((b2_blk, c_out, q), lambda g: (g, 0, 0)),
                  pl.BlockSpec((c_out, 1), lambda g: (0, 0)),
                  pl.BlockSpec((c_out, 1), lambda g: (0, 0))],
        out_specs=pl.BlockSpec((b2_blk, c_out, p_out), lambda g: (g, 0, 0)),
        compiler_params=pltpu.CompilerParams(
            dimension_semantics=("parallel",), vmem_limit_bytes=vmem_limit),
        cost_estimate=p2_cost,
    )(y_flat, scale, shift)

    # (N, C_out, H_out*W_out) -> NCHW: contiguous row-major reshape, no copy, no slice.
    return out_flat.reshape(n, c_out, h_out, w_out)


def reference_forward(x, weight, bias, gamma, beta, *, stride=1, padding=1):
    # Mirrors the kernel's intentional precision choices (bf16 MXU inputs, bf16 storage of the
    # conv+bias intermediate; BN stats from f32) so the comparison is tight.  A pure-f32
    # PyTorch Conv2d/BatchNorm2d differs from this by ~1e-2 max abs at these scales; set
    # MATMUL_DTYPE = Y_DTYPE = jnp.float32 above to recover exact-f32 semantics.
    y = jax.lax.conv_general_dilated(
        x.astype(MATMUL_DTYPE), weight.astype(MATMUL_DTYPE),
        window_strides=(stride, stride),
        padding=((padding, padding), (padding, padding)),
        dimension_numbers=("NCHW", "OIHW", "NCHW"),
        preferred_element_type=jnp.float32)
    y = y + bias.reshape(1, -1, 1, 1)
    mean = y.mean(axis=(0, 2, 3), keepdims=True)
    var = ((y - mean) ** 2).mean(axis=(0, 2, 3), keepdims=True)   # biased var (BN training)
    y_q = y.astype(Y_DTYPE).astype(jnp.float32)                   # matches Y_DTYPE y storage
    out = (gamma.reshape(1, -1, 1, 1) * (y_q - mean) / jnp.sqrt(var + BN_EPS)
           + beta.reshape(1, -1, 1, 1))
    return jnp.maximum(out, 0.0)


if __name__ == "__main__":
    key = jax.random.PRNGKey(0)
    k_x, k_w, k_b = jax.random.split(key, 3)

    N, C_IN, H, W = 2, 4, 16, 16
    C_OUT, KH, KW = 8, 3, 3
    PAD, STRIDE = 1, 1

    x = jax.random.normal(k_x, (N, C_IN, H, W), dtype=jnp.float32)

    # Deterministic parameter init (PyTorch-like fan-in uniform for conv; non-trivial BN affine).
    fan_in = C_IN * KH * KW
    bound = 1.0 / (fan_in ** 0.5)
    weight = jax.random.uniform(k_w, (C_OUT, C_IN, KH, KW), jnp.float32, -bound, bound)
    bias = jax.random.uniform(k_b, (C_OUT,), jnp.float32, -bound, bound)
    gamma = jnp.linspace(0.5, 1.5, C_OUT, dtype=jnp.float32)
    beta = jnp.linspace(-0.2, 0.2, C_OUT, dtype=jnp.float32)

    fwd = jax.jit(functools.partial(conv_block_forward, stride=STRIDE, padding=PAD))
    out = jax.block_until_ready(fwd(x, weight, bias, gamma, beta))

    ref = reference_forward(x, weight, bias, gamma, beta, stride=STRIDE, padding=PAD)
    assert out.shape == (N, C_OUT, H, W), out.shape
    max_err = float(jnp.max(jnp.abs(out - ref)))
    assert jnp.allclose(out, ref, rtol=2e-3, atol=2e-3), max_err

    print("KERNEL_OK")
</pallas_src>

<mosaic_0001>
module attributes {stable_mosaic.version = 11 : i64} {
  func.func @_conv_bias_stats_kernel(%arg0: i32, %arg1: memref<1x4x326xbf16, #tpu.memory_space<vmem>>, %arg2: memref<8x36xbf16, #tpu.memory_space<vmem>>, %arg3: memref<8x1xf32, #tpu.memory_space<vmem>>, %arg4: memref<1x8x288xbf16, #tpu.memory_space<vmem>>, %arg5: memref<1x8x2xf32, #tpu.memory_space<vmem>>, %arg6: memref<36x288xbf16, #tpu.memory_space<vmem>>) attributes {dimension_semantics = [#tpu.dimension_semantics<parallel>], iteration_bounds = array<i64: 2>, scalar_prefetch = 0 : i64, scratch_operands = 1 : i64, tpu.core_type = #tpu.core_type<tc>, window_params = [{transform_indices = @transform_0, window_bounds = array<i64: 1, 4, 326>}, {pipeline_mode = #tpu.pipeline_mode<synchronous>, transform_indices = @transform_1, window_bounds = array<i64: 8, 36>}, {pipeline_mode = #tpu.pipeline_mode<synchronous>, transform_indices = @transform_2, window_bounds = array<i64: 8, 1>}, {transform_indices = @transform_3, window_bounds = array<i64: 1, 8, 288>}, {transform_indices = @transform_4, window_bounds = array<i64: 1, 8, 2>}]} {
    %0 = tpu.iota {dimensions = array<i32: 1>} : vector<1x288xi32>
    %c18_i32 = arith.constant 18 : i32
    %c0_i32 = arith.constant 0 : i32
    %1 = arith.cmpi eq, %c18_i32, %c0_i32 : i32
    %c1_i32 = arith.constant 1 : i32
    %2 = arith.select %1, %c1_i32, %c18_i32 : i32
    %3 = vector.broadcast %2 : i32 to vector<1x288xi32>
    %4 = arith.remsi %0, %3 : vector<1x288xi32>
    %c0_i32_0 = arith.constant 0 : i32
    %5 = vector.broadcast %c0_i32_0 : i32 to vector<1x288xi32>
    %6 = arith.cmpi ne, %4, %5 : vector<1x288xi32>
    %c0_i32_1 = arith.constant 0 : i32
    %7 = vector.broadcast %c0_i32_1 : i32 to vector<1x288xi32>
    %8 = arith.cmpi slt, %4, %7 : vector<1x288xi32>
    %c0_i32_2 = arith.constant 0 : i32
    %9 = arith.cmpi slt, %2, %c0_i32_2 : i32
    %10 = vector.broadcast %9 : i1 to vector<1x288xi1>
    %11 = vector.broadcast %10 : vector<1x288xi1> to vector<1x288xi1>
    %12 = arith.xori %8, %11 : vector<1x288xi1>
    %13 = arith.andi %12, %6 : vector<1x288xi1>
    %14 = vector.broadcast %2 : i32 to vector<1x288xi32>
    %15 = arith.addi %4, %14 : vector<1x288xi32>
    %16 = arith.select %13, %15, %4 : vector<1x288xi1>, vector<1x288xi32>
    %c16_i32 = arith.constant 16 : i32
    %17 = vector.broadcast %c16_i32 : i32 to vector<1x288xi32>
    %18 = arith.cmpi slt, %16, %17 : vector<1x288xi32>
    %19 = arith.extui %18 : vector<1x288xi1> to vector<1x288xi32>
    %20 = arith.sitofp %19 : vector<1x288xi32> to vector<1x288xf32>
    %cst = arith.constant 0.000000e+00 : f32
    %21 = vector.broadcast %cst : f32 to vector<8x1xf32>
    %cst_3 = arith.constant 0.000000e+00 : f32
    %22 = vector.broadcast %cst_3 : f32 to vector<8x1xf32>
    %c0 = arith.constant 0 : index
    %c0_4 = arith.constant 0 : index
    %c0_5 = arith.constant 0 : index
    %23 = vector.load %arg1[%c0, %c0_4, %c0_5] : memref<1x4x326xbf16, #tpu.memory_space<vmem>>, vector<1x4x288xbf16>
    %24 = vector.shape_cast %23 : vector<1x4x288xbf16> to vector<4x288xbf16>
    %c0_6 = arith.constant 0 : index
    %c0_7 = arith.constant 0 : index
    %25 = vector.load %arg6[%c0_6, %c0_7] : memref<36x288xbf16, #tpu.memory_space<vmem>>, vector<4x288xbf16>
    tpu.vector_store %arg6[%c0_6, %c0_7], %24 {strides = array<i32>} : memref<36x288xbf16, #tpu.memory_space<vmem>>, vector<4x288xbf16>,
    %c0_8 = arith.constant 0 : index
    %c0_9 = arith.constant 0 : index
    %c1 = arith.constant 1 : index
    %26 = vector.load %arg1[%c0_8, %c0_9, %c1] : memref<1x4x326xbf16, #tpu.memory_space<vmem>>, vector<1x4x288xbf16>
    %27 = vector.shape_cast %26 : vector<1x4x288xbf16> to vector<4x288xbf16>
    %c4 = arith.constant 4 : index
    %c0_10 = arith.constant 0 : index
    %28 = vector.load %arg6[%c4, %c0_10] : memref<36x288xbf16, #tpu.memory_space<vmem>>, vector<4x288xbf16>
    tpu.vector_store %arg6[%c4, %c0_10], %27 {strides = array<i32>} : memref<36x288xbf16, #tpu.memory_space<vmem>>, vector<4x288xbf16>,
    %c0_11 = arith.constant 0 : index
    %c0_12 = arith.constant 0 : index
    %c2 = arith.constant 2 : index
    %29 = vector.load %arg1[%c0_11, %c0_12, %c2] : memref<1x4x326xbf16, #tpu.memory_space<vmem>>, vector<1x4x288xbf16>
    %30 = vector.shape_cast %29 : vector<1x4x288xbf16> to vector<4x288xbf16>
    %c8 = arith.constant 8 : index
    %c0_13 = arith.constant 0 : index
    %31 = vector.load %arg6[%c8, %c0_13] : memref<36x288xbf16, #tpu.memory_space<vmem>>, vector<4x288xbf16>
    tpu.vector_store %arg6[%c8, %c0_13], %30 {strides = array<i32>} : memref<36x288xbf16, #tpu.memory_space<vmem>>, vector<4x288xbf16>,
    %c0_14 = arith.constant 0 : index
    %c0_15 = arith.constant 0 : index
    %c18 = arith.constant 18 : index
    %32 = vector.load %arg1[%c0_14, %c0_15, %c18] : memref<1x4x326xbf16, #tpu.memory_space<vmem>>, vector<1x4x288xbf16>
    %33 = vector.shape_cast %32 : vector<1x4x288xbf16> to vector<4x288xbf16>
    %c12 = arith.constant 12 : index
    %c0_16 = arith.constant 0 : index
    %34 = vector.load %arg6[%c12, %c0_16] : memref<36x288xbf16, #tpu.memory_space<vmem>>, vector<4x288xbf16>
    tpu.vector_store %arg6[%c12, %c0_16], %33 {strides = array<i32>} : memref<36x288xbf16, #tpu.memory_space<vmem>>, vector<4x288xbf16>,
    %c0_17 = arith.constant 0 : index
    %c0_18 = arith.constant 0 : index
    %c19 = arith.constant 19 : index
    %35 = vector.load %arg1[%c0_17, %c0_18, %c19] : memref<1x4x326xbf16, #tpu.memory_space<vmem>>, vector<1x4x288xbf16>
    %36 = vector.shape_cast %35 : vector<1x4x288xbf16> to vector<4x288xbf16>
    %c16 = arith.constant 16 : index
    %c0_19 = arith.constant 0 : index
    %37 = vector.load %arg6[%c16, %c0_19] : memref<36x288xbf16, #tpu.memory_space<vmem>>, vector<4x288xbf16>
    tpu.vector_store %arg6[%c16, %c0_19], %36 {strides = array<i32>} : memref<36x288xbf16, #tpu.memory_space<vmem>>, vector<4x288xbf16>,
    %c0_20 = arith.constant 0 : index
    %c0_21 = arith.constant 0 : index
    %c20 = arith.constant 20 : index
    %38 = vector.load %arg1[%c0_20, %c0_21, %c20] : memref<1x4x326xbf16, #tpu.memory_space<vmem>>, vector<1x4x288xbf16>
    %39 = vector.shape_cast %38 : vector<1x4x288xbf16> to vector<4x288xbf16>
    %c20_22 = arith.constant 20 : index
    %c0_23 = arith.constant 0 : index
    %40 = vector.load %arg6[%c20_22, %c0_23] : memref<36x288xbf16, #tpu.memory_space<vmem>>, vector<4x288xbf16>
    tpu.vector_store %arg6[%c20_22, %c0_23], %39 {strides = array<i32>} : memref<36x288xbf16, #tpu.memory_space<vmem>>, vector<4x288xbf16>,
    %c0_24 = arith.constant 0 : index
    %c0_25 = arith.constant 0 : index
    %c36 = arith.constant 36 : index
    %41 = vector.load %arg1[%c0_24, %c0_25, %c36] : memref<1x4x326xbf16, #tpu.memory_space<vmem>>, vector<1x4x288xbf16>
    %42 = vector.shape_cast %41 : vector<1x4x288xbf16> to vector<4x288xbf16>
    %c24 = arith.constant 24 : index
    %c0_26 = arith.constant 0 : index
    %43 = vector.load %arg6[%c24, %c0_26] : memref<36x288xbf16, #tpu.memory_space<vmem>>, vector<4x288xbf16>
    tpu.vector_store %arg6[%c24, %c0_26], %42 {strides = array<i32>} : memref<36x288xbf16, #tpu.memory_space<vmem>>, vector<4x288xbf16>,
    %c0_27 = arith.constant 0 : index
    %c0_28 = arith.constant 0 : index
    %c37 = arith.constant 37 : index
    %44 = vector.load %arg1[%c0_27, %c0_28, %c37] : memref<1x4x326xbf16, #tpu.memory_space<vmem>>, vector<1x4x288xbf16>
    %45 = vector.shape_cast %44 : vector<1x4x288xbf16> to vector<4x288xbf16>
    %c28 = arith.constant 28 : index
    %c0_29 = arith.constant 0 : index
    %46 = vector.load %arg6[%c28, %c0_29] : memref<36x288xbf16, #tpu.memory_space<vmem>>, vector<4x288xbf16>
    tpu.vector_store %arg6[%c28, %c0_29], %45 {strides = array<i32>} : memref<36x288xbf16, #tpu.memory_space<vmem>>, vector<4x288xbf16>,
    %c0_30 = arith.constant 0 : index
    %c0_31 = arith.constant 0 : index
    %c38 = arith.constant 38 : index
    %47 = vector.load %arg1[%c0_30, %c0_31, %c38] : memref<1x4x326xbf16, #tpu.memory_space<vmem>>, vector<1x4x288xbf16>
    %48 = vector.shape_cast %47 : vector<1x4x288xbf16> to vector<4x288xbf16>
    %c32 = arith.constant 32 : index
    %c0_32 = arith.constant 0 : index
    %49 = vector.load %arg6[%c32, %c0_32] : memref<36x288xbf16, #tpu.memory_space<vmem>>, vector<4x288xbf16>
    tpu.vector_store %arg6[%c32, %c0_32], %48 {strides = array<i32>} : memref<36x288xbf16, #tpu.memory_space<vmem>>, vector<4x288xbf16>,
    %c0_33 = arith.constant 0 : index
    %c0_34 = arith.constant 0 : index
    %50 = vector.load %arg2[%c0_33, %c0_34] : memref<8x36xbf16, #tpu.memory_space<vmem>>, vector<8x36xbf16>
    %c0_35 = arith.constant 0 : index
    %c0_36 = arith.constant 0 : index
    %51 = vector.load %arg6[%c0_35, %c0_36] : memref<36x288xbf16, #tpu.memory_space<vmem>>, vector<36x288xbf16>
    %cst_37 = arith.constant dense<0.000000e+00> : vector<8x288xf32>
    %52 = tpu.matmul %50, %51, %cst_37 {dimension_numbers = #tpu.dot_dimension_numbers<[1], [0], [0], [1], [0, 0, 1, 1], [], []>} : vector<8x36xbf16>, vector<36x288xbf16>, vector<8x288xf32> -> vector<8x288xf32>
    %c0_38 = arith.constant 0 : index
    %c0_39 = arith.constant 0 : index
    %53 = vector.load %arg3[%c0_38, %c0_39] : memref<8x1xf32, #tpu.memory_space<vmem>>, vector<8x1xf32>
    %54 = vector.broadcast %53 : vector<8x1xf32> to vector<8x288xf32>
    %55 = arith.addf %52, %54 : vector<8x288xf32>
    %56 = arith.truncf %55 : vector<8x288xf32> to vector<8x288xbf16>
    %c0_40 = arith.constant 0 : index
    %c0_41 = arith.constant 0 : index
    %c0_42 = arith.constant 0 : index
    %57 = vector.load %arg4[%c0_40, %c0_41, %c0_42] : memref<1x8x288xbf16, #tpu.memory_space<vmem>>, vector<1x8x288xbf16>
    %58 = vector.shape_cast %57 : vector<1x8x288xbf16> to vector<8x288xbf16>
    %59 = vector.shape_cast %56 : vector<8x288xbf16> to vector<1x8x288xbf16>
    tpu.vector_store %arg4[%c0_40, %c0_41, %c0_42], %59 {strides = array<i32>} : memref<1x8x288xbf16, #tpu.memory_space<vmem>>, vector<1x8x288xbf16>,
    %60 = vector.broadcast %20 : vector<1x288xf32> to vector<8x288xf32>
    %61 = arith.mulf %55, %60 : vector<8x288xf32>
    %cst_43 = arith.constant dense<0.000000e+00> : vector<8xf32>
    %62 = vector.multi_reduction <add>, %61, %cst_43 [1] : vector<8x288xf32> to vector<8xf32>
    %63 = vector.shape_cast %62 : vector<8xf32> to vector<8x1xf32>
    %64 = arith.addf %21, %63 : vector<8x1xf32>
    %65 = arith.mulf %61, %61 : vector<8x288xf32>
    %cst_44 = arith.constant dense<0.000000e+00> : vector<8xf32>
    %66 = vector.multi_reduction <add>, %65, %cst_44 [1] : vector<8x288xf32> to vector<8xf32>
    %67 = vector.shape_cast %66 : vector<8xf32> to vector<8x1xf32>
    %68 = arith.addf %22, %67 : vector<8x1xf32>
    %c0_45 = arith.constant 0 : index
    %c0_46 = arith.constant 0 : index
    %c0_47 = arith.constant 0 : index
    %69 = vector.load %arg5[%c0_45, %c0_46, %c0_47] : memref<1x8x2xf32, #tpu.memory_space<vmem>>, vector<1x8x1xf32>
    %70 = vector.shape_cast %69 : vector<1x8x1xf32> to vector<8x1xf32>
    %71 = vector.shape_cast %64 : vector<8x1xf32> to vector<1x8x1xf32>
    tpu.vector_store %arg5[%c0_45, %c0_46, %c0_47], %71 {strides = array<i32>} : memref<1x8x2xf32, #tpu.memory_space<vmem>>, vector<1x8x1xf32>,
    %c0_48 = arith.constant 0 : index
    %c0_49 = arith.constant 0 : index
    %c1_50 = arith.constant 1 : index
    %72 = vector.load %arg5[%c0_48, %c0_49, %c1_50] : memref<1x8x2xf32, #tpu.memory_space<vmem>>, vector<1x8x1xf32>
    %73 = vector.shape_cast %72 : vector<1x8x1xf32> to vector<8x1xf32>
    %74 = vector.shape_cast %68 : vector<8x1xf32> to vector<1x8x1xf32>
    tpu.vector_store %arg5[%c0_48, %c0_49, %c1_50], %74 {strides = array<i32>} : memref<1x8x2xf32, #tpu.memory_space<vmem>>, vector<1x8x1xf32>,
    return
  }
  func.func @transform_0(%arg0: i32) -> (i32, i32, i32) {
    %c0_i32 = arith.constant 0 : i32
    %c0_i32_0 = arith.constant 0 : i32
    %c0_i32_1 = arith.constant 0 : i32
    return %arg0, %c0_i32, %c0_i32_0 : i32, i32, i32
  }
  func.func @transform_1(%arg0: i32) -> (i32, i32) {
    %c0_i32 = arith.constant 0 : i32
    %c0_i32_0 = arith.constant 0 : i32
    %c0_i32_1 = arith.constant 0 : i32
    return %c0_i32, %c0_i32_0 : i32, i32
  }
  func.func @transform_2(%arg0: i32) -> (i32, i32) {
    %c0_i32 = arith.constant 0 : i32
    %c0_i32_0 = arith.constant 0 : i32
    %c0_i32_1 = arith.constant 0 : i32
    return %c0_i32, %c0_i32_0 : i32, i32
  }
  func.func @transform_3(%arg0: i32) -> (i32, i32, i32) {
    %c0_i32 = arith.constant 0 : i32
    %c0_i32_0 = arith.constant 0 : i32
    %c0_i32_1 = arith.constant 0 : i32
    return %arg0, %c0_i32, %c0_i32_0 : i32, i32, i32
  }
  func.func @transform_4(%arg0: i32) -> (i32, i32, i32) {
    %c0_i32 = arith.constant 0 : i32
    %c0_i32_0 = arith.constant 0 : i32
    %c0_i32_1 = arith.constant 0 : i32
    return %arg0, %c0_i32, %c0_i32_0 : i32, i32, i32
  }
}

module attributes {stable_mosaic.version = 11 : i64} {
  func.func @_bn_relu_compact_kernel(%arg0: i32, %arg1: memref<1x8x288xbf16, #tpu.memory_space<vmem>>, %arg2: memref<8x1xf32, #tpu.memory_space<vmem>>, %arg3: memref<8x1xf32, #tpu.memory_space<vmem>>, %arg4: memref<1x8x256xf32, #tpu.memory_space<vmem>>) attributes {dimension_semantics = [#tpu.dimension_semantics<parallel>], iteration_bounds = array<i64: 2>, scalar_prefetch = 0 : i64, scratch_operands = 0 : i64, tpu.core_type = #tpu.core_type<tc>, window_params = [{transform_indices = @transform_0, window_bounds = array<i64: 1, 8, 288>}, {pipeline_mode = #tpu.pipeline_mode<synchronous>, transform_indices = @transform_1, window_bounds = array<i64: 8, 1>}, {pipeline_mode = #tpu.pipeline_mode<synchronous>, transform_indices = @transform_2, window_bounds = array<i64: 8, 1>}, {transform_indices = @transform_3, window_bounds = array<i64: 1, 8, 256>}]} {
    %c0 = arith.constant 0 : index
    %c0_0 = arith.constant 0 : index
    %c0_1 = arith.constant 0 : index
    %0 = vector.load %arg1[%c0, %c0_0, %c0_1] : memref<1x8x288xbf16, #tpu.memory_space<vmem>>, vector<1x8x288xbf16>
    %1 = arith.extf %0 : vector<1x8x288xbf16> to vector<1x8x288xf32>
    %c0_2 = arith.constant 0 : index
    %c0_3 = arith.constant 0 : index
    %2 = vector.load %arg2[%c0_2, %c0_3] : memref<8x1xf32, #tpu.memory_space<vmem>>, vector<8x1xf32>
    %3 = vector.shape_cast %2 : vector<8x1xf32> to vector<1x8x1xf32>
    %c0_4 = arith.constant 0 : index
    %c0_5 = arith.constant 0 : index
    %4 = vector.load %arg3[%c0_4, %c0_5] : memref<8x1xf32, #tpu.memory_space<vmem>>, vector<8x1xf32>
    %5 = vector.shape_cast %4 : vector<8x1xf32> to vector<1x8x1xf32>
    %6 = vector.broadcast %3 : vector<1x8x1xf32> to vector<1x8x288xf32>
    %7 = arith.mulf %1, %6 : vector<1x8x288xf32>
    %8 = vector.broadcast %5 : vector<1x8x1xf32> to vector<1x8x288xf32>
    %9 = arith.addf %7, %8 : vector<1x8x288xf32>
    %cst = arith.constant 0.000000e+00 : f32
    %10 = vector.broadcast %cst : f32 to vector<1x8x288xf32>
    %11 = arith.maximumf %9, %10 : vector<1x8x288xf32>
    %12 = vector.extract_strided_slice %11 {offsets = [0, 0, 0], sizes = [1, 8, 16], strides = [1, 1, 1]} : vector<1x8x288xf32> to vector<1x8x16xf32>
    %13 = vector.extract_strided_slice %11 {offsets = [0, 0, 18], sizes = [1, 8, 16], strides = [1, 1, 1]} : vector<1x8x288xf32> to vector<1x8x16xf32>
    %14 = vector.extract_strided_slice %11 {offsets = [0, 0, 36], sizes = [1, 8, 16], strides = [1, 1, 1]} : vector<1x8x288xf32> to vector<1x8x16xf32>
    %15 = vector.extract_strided_slice %11 {offsets = [0, 0, 54], sizes = [1, 8, 16], strides = [1, 1, 1]} : vector<1x8x288xf32> to vector<1x8x16xf32>
    %16 = vector.extract_strided_slice %11 {offsets = [0, 0, 72], sizes = [1, 8, 16], strides = [1, 1, 1]} : vector<1x8x288xf32> to vector<1x8x16xf32>
    %17 = vector.extract_strided_slice %11 {offsets = [0, 0, 90], sizes = [1, 8, 16], strides = [1, 1, 1]} : vector<1x8x288xf32> to vector<1x8x16xf32>
    %18 = vector.extract_strided_slice %11 {offsets = [0, 0, 108], sizes = [1, 8, 16], strides = [1, 1, 1]} : vector<1x8x288xf32> to vector<1x8x16xf32>
    %19 = vector.extract_strided_slice %11 {offsets = [0, 0, 126], sizes = [1, 8, 16], strides = [1, 1, 1]} : vector<1x8x288xf32> to vector<1x8x16xf32>
    %20 = vector.extract_strided_slice %11 {offsets = [0, 0, 144], sizes = [1, 8, 16], strides = [1, 1, 1]} : vector<1x8x288xf32> to vector<1x8x16xf32>
    %21 = vector.extract_strided_slice %11 {offsets = [0, 0, 162], sizes = [1, 8, 16], strides = [1, 1, 1]} : vector<1x8x288xf32> to vector<1x8x16xf32>
    %22 = vector.extract_strided_slice %11 {offsets = [0, 0, 180], sizes = [1, 8, 16], strides = [1, 1, 1]} : vector<1x8x288xf32> to vector<1x8x16xf32>
    %23 = vector.extract_strided_slice %11 {offsets = [0, 0, 198], sizes = [1, 8, 16], strides = [1, 1, 1]} : vector<1x8x288xf32> to vector<1x8x16xf32>
    %24 = vector.extract_strided_slice %11 {offsets = [0, 0, 216], sizes = [1, 8, 16], strides = [1, 1, 1]} : vector<1x8x288xf32> to vector<1x8x16xf32>
    %25 = vector.extract_strided_slice %11 {offsets = [0, 0, 234], sizes = [1, 8, 16], strides = [1, 1, 1]} : vector<1x8x288xf32> to vector<1x8x16xf32>
    %26 = vector.extract_strided_slice %11 {offsets = [0, 0, 252], sizes = [1, 8, 16], strides = [1, 1, 1]} : vector<1x8x288xf32> to vector<1x8x16xf32>
    %27 = vector.extract_strided_slice %11 {offsets = [0, 0, 270], sizes = [1, 8, 16], strides = [1, 1, 1]} : vector<1x8x288xf32> to vector<1x8x16xf32>
    %28 = tpu.concatenate %12, %13, %14, %15, %16, %17, %18, %19, %20, %21, %22, %23, %24, %25, %26, %27 in 2 : vector<1x8x16xf32>, vector<1x8x16xf32>, vector<1x8x16xf32>, vector<1x8x16xf32>, vector<1x8x16xf32>, vector<1x8x16xf32>, vector<1x8x16xf32>, vector<1x8x16xf32>, vector<1x8x16xf32>, vector<1x8x16xf32>, vector<1x8x16xf32>, vector<1x8x16xf32>, vector<1x8x16xf32>, vector<1x8x16xf32>, vector<1x8x16xf32>, vector<1x8x16xf32> -> vector<1x8x256xf32>
    %c0_6 = arith.constant 0 : index
    %c0_7 = arith.constant 0 : index
    %c0_8 = arith.constant 0 : index
    %29 = vector.load %arg4[%c0_6, %c0_7, %c0_8] : memref<1x8x256xf32, #tpu.memory_space<vmem>>, vector<1x8x256xf32>
    tpu.vector_store %arg4[%c0_6, %c0_7, %c0_8], %28 {strides = array<i32>} : memref<1x8x256xf32, #tpu.memory_space<vmem>>, vector<1x8x256xf32>,
    return
  }
  func.func @transform_0(%arg0: i32) -> (i32, i32, i32) {
    %c0_i32 = arith.constant 0 : i32
    %c0_i32_0 = arith.constant 0 : i32
    %c0_i32_1 = arith.constant 0 : i32
    return %arg0, %c0_i32, %c0_i32_0 : i32, i32, i32
  }
  func.func @transform_1(%arg0: i32) -> (i32, i32) {
    %c0_i32 = arith.constant 0 : i32
    %c0_i32_0 = arith.constant 0 : i32
    %c0_i32_1 = arith.constant 0 : i32
    return %c0_i32, %c0_i32_0 : i32, i32
  }
  func.func @transform_2(%arg0: i32) -> (i32, i32) {
    %c0_i32 = arith.constant 0 : i32
    %c0_i32_0 = arith.constant 0 : i32
    %c0_i32_1 = arith.constant 0 : i32
    return %c0_i32, %c0_i32_0 : i32, i32
  }
  func.func @transform_3(%arg0: i32) -> (i32, i32, i32) {
    %c0_i32 = arith.constant 0 : i32
    %c0_i32_0 = arith.constant 0 : i32
    %c0_i32_1 = arith.constant 0 : i32
    return %arg0, %c0_i32, %c0_i32_0 : i32, i32, i32
  }
}

</mosaic_0001>

<bundles_post_ra>
// kernel: conv_block_forward.3
= control target key start
LH: loop header
LB: loop body
LE: loop exit
PB: predicated region body
PF: predicated region fallthrough
CT: control target
= control target key end

     0   :  { %s412_s12 = smov 0   ;;  %s459_s0 = inlined_call_operand.vmem [shape: bf16[2,8,288], index: 0, kind: input, shape index: {}]   ;;  %s460_s1 = inlined_call_operand.vmem [shape: f32[8,1], index: 1, kind: input, shape index: {}]   ;;  %s461_s2 = inlined_call_operand.vmem [shape: f32[8,1], index: 2, kind: input, shape index: {}]   ;;  %s462_s3 = inlined_call_operand.vmem [shape: f32[2,8,256], index: 3, kind: output, shape index: {}]  }
   0x1 LB: > { %s331_s13 = sadd.s32 4294967295, %s374_s12   ;;  %p335_p0 = scmp.ge.s32.totalorder %s374_s12, 1  ;;  %s374_s12 = sphi %s412_s12, %s13_s12  }
   0x2   : > { %p137_p1 = scmp.lt.s32.totalorder %s374_s12, 3 }
   0x4   : > { %p138_p2 = pnand %p335_p0, %p137_p1 }
   0x5   : > { %p161_p3 = scmp.lt.s32.totalorder (!%p138_p2), %s331_s13, 1  ;;  %s377_s22 = smov (!%p138_p2), 108  }
   0x6   : > { %141 = sbr.rel (%p138_p2) target bundleno = 299 (0x12b), region = 32  ;;  %s378_s23 = smov (!%p138_p2), 112  }
   0x7   : > { %s379_s24 = smov (!%p138_p2), 126   ;;  %s380_s25 = smov (!%p138_p2), 110  }
   0x8   : > { %s381_s26 = smov (!%p138_p2), 120   ;;  %s382_s27 = smov (!%p138_p2), 124  }
   0x9   : > { %s383_s28 = smov (!%p138_p2), 106   ;;  %s384_s29 = smov (!%p138_p2), 102  }
   0xa   : > { %s385_s30 = smov (!%p138_p2), 122   ;;  %s386_s4 = smov (!%p138_p2), 118  }
   0xb   : > { %v176_v0 = vld [vmem:[%s460_s1] sm:$0xff]  ;;  %v376_v1 = vmov 0   ;;  %s464_s13 = smov (!%p161_p3, %s331_s13), 1  ;;  %s387_s5 = smov 116   ;;  %vm253_vm0 = vcmask 130048   ;;  %vm255_vm1 = vcmask 261120  }
   0xc   : > { %367 = vset.pattern.permute.xlu0 %v376_v1  ;;  %v177_v2 = vld [vmem:[%s461_s2] sm:$0xff]  ;;  %s342_s18 = smul.u32 12, %s464_s13  ;;  %s388_s6 = smov 104   ;;  %vm257_vm2 = vcmask 392192   ;;  %vm259_vm3 = vcmask 523264   ;;  %vm247_vm4 = vcmask 818176  }
   0xd   : > { %180 = vperm.xlu0 %367, %v176_v0   ;;  %s389_s7 = smov 100   ;;  %s390_s8 = smov 98   ;;  %vm261_vm5 = vcmask 654336   ;;  %vm265_vm6 = vcmask 916480   ;;  %vm263_vm7 = vcmask 785408   ;;  %vm221_vm8 = vcmask 932864  }
   0xe   : > { %s165_s21 = scalar_lea.vmem %s459_s0, %s342_s18  ;;  %s391_s9 = smov 114  }
   0xf   : > { %v171_v4 = vld [vmem:[%s165_s21] sm:$0xff]  ;;  %v172_v14 = vld [vmem:[%s165_s21 + $0x8] sm:$0xf]  ;;  %s341_s10 = sshll.u32 %s464_s13, 4 }
  0x10   : > { %v173_v5 = vunpack.c.l.bf16 %v171_v4  ;;  %v174_v6 = vunpack.c.h.bf16 %v171_v4  ;;  %v175_v15 = vunpack.c.l.bf16 %v172_v14  ;;  %s170_s15 = scalar_lea.vmem %s462_s3, %s341_s10 }
  0x15   : > { %188 = vperm.xlu0 %367, %v177_v2  }
  0x7f   : > { %v181_v3 = vpop.permute.xlu0 %180 }
  0x80   : > { %v183_v7 = vmul.f32 %v181_v3, %v173_v5  ;;  %v184_v8 = vmul.f32 %v181_v3, %v174_v6  ;;  %v185_v16 = vmul.f32 %v181_v3, %v175_v15 }
  0x87   : > { %v189_v9 = vpop.permute.xlu0 %188 }
  0x88   : > { %v191_v10 = vadd.f32 %v189_v9, %v183_v7  ;;  %v192_v11 = vadd.f32 %v189_v9, %v184_v8  ;;  %v193_v17 = vadd.f32 %v189_v9, %v185_v16 }
  0x8a   : > { %v432_v12 = vmax.f32 %v191_v10, 0.0  ;;  %v195_v13 = vmax.f32 %v192_v11, 0.0  ;;  %v196_v18 = vmax.f32 %v193_v17, 0.0 }
  0x8c   : > { %230 = vrot.lane.b32.xlu0 %v195_v13, %s377_s22  ;;  %224 = vrot.lane.b32.xlu2 %v195_v13, %s378_s23 }
  0x8d   : > { %198 = vrot.lane.b32.xlu1 %v432_v12, %s379_s24 }
  0x94   : > { %227 = vrot.lane.b32.xlu2 %v195_v13, %s380_s25  ;;  %207 = vrot.lane.b32.xlu0 %v432_v12, %s381_s26 }
  0x95   : > { %201 = vrot.lane.b32.xlu1 %v432_v12, %s382_s27 }
  0x9c   : > { %233 = vrot.lane.b32.xlu2 %v195_v13, %s383_s28  ;;  %239 = vrot.lane.b32.xlu0 %v195_v13, %s384_s29 }
  0x9d   : > { %204 = vrot.lane.b32.xlu1 %v432_v12, %s385_s30 }
  0xa4   : > { %210 = vrot.lane.b32.xlu2 %v432_v12, %s386_s4  ;;  %213 = vrot.lane.b32.xlu0 %v432_v12, %s387_s5 }
  0xa5   : > { %236 = vrot.lane.b32.xlu1 %v195_v13, %s388_s6 }
  0xac   : > { %245 = vrot.lane.b32.xlu2 %v196_v18, %s389_s7  ;;  %250 = vrot.lane.b32.xlu0 %v196_v18, %s390_s8 }
  0xad   : > { %243 = vrot.lane.b32.xlu1 %v195_v13, %s389_s7 }
  0xb4   : > { %219 = vrot.lane.b32.xlu2 %v195_v13, %s391_s9 }
  0xb5   : > { %217 = vrot.lane.b32.xlu1 %v432_v12, %s391_s9 }
  0xe6   : > { %v225_v19 = vpop.permute.xlu2 %224 }
  0xee   : > { %v228_v21 = vpop.permute.xlu2 %227 }
  0xef   : > { %v267_v31 = vsel %vm253_vm0, %v225_v19, %v228_v21 }
  0xf6   : > { %v234_v25 = vpop.permute.xlu2 %233 }
  0xfe   : > { %v231_v20 = vpop.permute.xlu0 %230  ;;  %v211_v28 = vpop.permute.xlu2 %210 }
  0xff   : > { %v199_v22 = vpop.permute.xlu1 %198  ;;  %v268_v32 = vsel %vm255_vm1, %v267_v31, %v231_v20 }
 0x100   : > { %v269_v33 = vsel %vm257_vm2, %v268_v32, %v234_v25  ;;  %v254_v36 = vsel %vm253_vm0, %v432_v12, %v199_v22 }
 0x106   : > { %v208_v23 = vpop.permute.xlu0 %207  ;;  %v246_v34 = vpop.permute.xlu2 %245 }
 0x107   : > { %v202_v24 = vpop.permute.xlu1 %201 }
 0x108   : > { %v256_v38 = vsel %vm255_vm1, %v254_v36, %v202_v24 }
 0x10e   : > { %v240_v26 = vpop.permute.xlu0 %239  ;;  %v220_v46 = vpop.permute.xlu2 %219 }
 0x10f   : > { %v205_v27 = vpop.permute.xlu1 %204 }
 0x110   : > { %v258_v41 = vsel %vm257_vm2, %v256_v38, %v205_v27 }
 0x111   : > { %v260_v45 = vsel %vm259_vm3, %v258_v41, %v208_v23 }
 0x112   : > { %v262_v47 = vsel %vm261_vm5, %v260_v45, %v211_v28 }
 0x116   : > { %v214_v29 = vpop.permute.xlu0 %213 }
 0x117   : > { %v237_v30 = vpop.permute.xlu1 %236  ;;  %v264_v49 = vsel %vm263_vm7, %v262_v47, %v214_v29 }
 0x118   : > { %v270_v35 = vsel %vm259_vm3, %v269_v33, %v237_v30 }
 0x119   : > { %v271_v39 = vsel %vm261_vm5, %v270_v35, %v240_v26 }
 0x11e   : > { %v251_v42 = vpop.permute.xlu0 %250 }
 0x11f   : > { %v244_v37 = vpop.permute.xlu1 %243 }
 0x120   : > { %v248_v40 = vsel %vm247_vm4, %v244_v37, %v246_v34 }
 0x121   : > { %v272_v43 = vsel %vm263_vm7, %v271_v39, %v248_v40 }
 0x122   : > { %v273_v44 = vsel %vm265_vm6, %v272_v43, %v251_v42 }
 0x123   : > { %275 = vst [vmem:[%s170_s15 + $0x8] sm:$0xff] %v273_v44 }
 0x127   : > { %v218_v48 = vpop.permute.xlu1 %217 }
 0x128   : > { %v222_v50 = vsel %vm221_vm8, %v218_v48, %v220_v46 }
 0x129   : > { %v266_v51 = vsel %vm265_vm6, %v264_v49, %v222_v50 }
 0x12a   : > { %274 = vst [vmem:[%s170_s15] sm:$0xff] %v266_v51 }
 0x12b PF: > { %s13_s12 = sadd.s32 1, %s374_s12  }
 0x12c   : > { %p10_p4 = scmp.ge.s32.totalorder %s13_s12, 4  }
 0x12e   :  { %12 = sbr.rel (!%p10_p4) target bundleno = 1 (0x1), region = 62 }

// kernel: conv_block_forward.2
= control target key start
LH: loop header
LB: loop body
LE: loop exit
PB: predicated region body
PF: predicated region fallthrough
CT: control target
= control target key end

     0   :  { %s836_s15 = smov 0   ;;  %s927_s0 = inlined_call_operand.vmem [shape: bf16[2,4,326], index: 0, kind: input, shape index: {}]   ;;  %s928_s1 = inlined_call_operand.vmem [shape: bf16[8,36], index: 1, kind: input, shape index: {}]   ;;  %s929_s2 = inlined_call_operand.vmem [shape: f32[8,1], index: 2, kind: input, shape index: {}]   ;;  %s930_s3 = inlined_call_operand.vmem [shape: bf16[2,8,288], index: 3, kind: output, shape index: {0}]   ;;  %s931_s4 = inlined_call_operand.vmem [shape: f32[2,8,2], index: 4, kind: output, shape index: {1}]  }
   0x1 LB: > { %s725_s16 = sadd.s32 4294967295, %s799_s15   ;;  %p729_p0 = scmp.ge.s32.totalorder %s799_s15, 1  ;;  %s799_s15 = sphi %s836_s15, %s15_s15  }
   0x2   : > { %p165_p1 = scmp.lt.s32.totalorder %s799_s15, 3 }
   0x4   : > { %p166_p2 = pnand %p729_p0, %p165_p1 }
   0x5   : > { %p195_p3 = scmp.lt.s32.totalorder (!%p166_p2), %s725_s16, 1  ;;  %s801_s21 = smov (!%p166_p2), 127  }
   0x6   : > { %169 = sbr.rel (%p166_p2) target bundleno = 497 (0x1f1), region = 32  ;;  %s802_s22 = smov (!%p166_p2), 126  }
   0x7   : > { %s803_s23 = smov (!%p166_p2), 109   ;;  %s804_s24 = smov (!%p166_p2), 108  }
   0x8   : > { %s805_s25 = smov (!%p166_p2), 92   ;;  %s806_s26 = smov (!%p166_p2), 91  }
   0x9   : > { %s807_s27 = smov (!%p166_p2), 90   ;;  %s808_s28 = smov (!%p166_p2), 110  }
   0xb   : > { %s933_s16 = smov (!%p195_p3, %s725_s16), 1  ;;  %vm333_vm0 = vcmask 254976   ;;  %vm356_vm1 = vcmask 257026   ;;  %vm349_vm2 = vcmask 1043456   ;;  %vm413_vm3 = vcmask 891904  }
   0xc   : > { %s771_s17 = smul.u32 6, %s933_s16  ;;  %vm454_vm4 = vcmask 752640   ;;  %vm434_vm5 = vcmask 883712   ;;  %vm372_vm6 = vcmask 1031168   ;;  %vm351_vm7 = vcmask 1039360   ;;  %s732_s11 = sshll.u32 %s933_s16, 3 }
   0xd   : > { %vm475_vm8 = vcmask 744448   ;;  %vm495_vm9 = vcmask 736256   ;;  %vm562_vm10 = vcmask 1041408   ;;  %vm393_vm11 = vcmask 900096   ;;  %s772_s7 = smul.u32 12, %s933_s16  ;;  %s208_s14 = scalar_lea.vmem %s931_s4, %s732_s11 }
   0xe   : > { %s850_s20 = scalar_lea.vmem %s927_s0, %s771_s17  ;;  %vm558_vm12 = vcmask 293888  }
   0xf   : > { %v325_v0 = vld [vmem:[%s850_s20] sm:$0x3f]  ;;  %s204_s10 = scalar_lea.vmem %s930_s3, %s772_s7 }
  0x10   : > { %327 = vst [vmem:[#allocation1] ss:$2 sm:$0xff] %v325_v0  ;;  %v335_v1 = vld [vmem:[%s850_s20] sm:$0x3f] }
  0x11   : > { %v358_v4 = vld [vmem:[%s850_s20] sm:$0x3f] }
  0x12   : > { %v378_v7 = vld [vmem:[%s850_s20] sm:$0x3f] }
  0x13   : > { %v399_v10 = vld [vmem:[%s850_s20] sm:$0x3f] }
  0x14   : > { %v419_v13 = vld [vmem:[%s850_s20] sm:$0x3f] }
  0x15   : > { %v440_v16 = vld [vmem:[%s850_s20] sm:$0x3f] }
  0x16   : > { %v460_v19 = vld [vmem:[%s850_s20] sm:$0x3f] }
  0x17   : > { %v328_v2 = vld.sshfl [vmem:[#allocation1] sm:$0xff pattern:$0x75643120]  ;;  %v329_v3 = vld.sshfl [vmem:[#allocation1 + $0x8] sm:$0xff pattern:$0x75643120] }
  0x18   : > { %338 = vst [vmem:[#allocation1 + $0x1] ss:$2 sm:$0xff] %v335_v1  ;;  %v481_v22 = vld [vmem:[%s850_s20] sm:$0x3f] }
  0x19   : > { %332 = vst [vmem:[#allocation2] sm:$0x33] %v328_v2 }
  0x1a   : > { %334 = vst.msk [vmem:[#allocation2 + $0x8] sm:$0x3] %vm333_vm0, %v329_v3 }
  0x1f   : > { %v341_v5 = vld.sshfl [vmem:[#allocation1 + $0x8] sm:$0xff pattern:$0x75643120]  ;;  %v339_v6 = vld.sshfl [vmem:[#allocation1] sm:$0xff pattern:$0x75643120] }
  0x20   : > { %345 = vrot.lane.b32.xlu1 %v341_v5, %s801_s21  ;;  %360 = vst [vmem:[#allocation1] ss:$2 sm:$0xff] %v358_v4  ;;  %v512_v5 = vld [vmem:[%s929_s2] sm:$0xff] }
  0x27   : > { %v361_v8 = vld.sshfl [vmem:[#allocation1] sm:$0xff pattern:$0x75643120]  ;;  %v363_v9 = vld.sshfl [vmem:[#allocation1 + $0x8] sm:$0xff pattern:$0x75643120] }
  0x28   : > { %381 = vst [vmem:[#allocation1 + $0x1] ss:$2 sm:$0xff] %v378_v7  ;;  %367 = vrot.lane.b32.xlu2 %v363_v9, %s802_s22 }
  0x2f   : > { %v382_v11 = vld.sshfl [vmem:[#allocation1] sm:$0xff pattern:$0x75643120]  ;;  %v384_v12 = vld.sshfl [vmem:[#allocation1 + $0x8] sm:$0xff pattern:$0x75643120] }
  0x30   : > { %401 = vst [vmem:[#allocation1] ss:$2 sm:$0xff] %v399_v10 }
  0x37   : > { %v404_v14 = vld.sshfl [vmem:[#allocation1 + $0x8] sm:$0xff pattern:$0x75643120]  ;;  %v402_v15 = vld.sshfl [vmem:[#allocation1] sm:$0xff pattern:$0x75643120] }
  0x38   : > { %408 = vrot.lane.b32.xlu1 %v404_v14, %s803_s23  ;;  %422 = vst [vmem:[#allocation1 + $0x1] ss:$2 sm:$0xff] %v419_v13  ;;  %406 = vrot.lane.b32.xlu0 %v402_v15, %s803_s23 }
  0x3f   : > { %v425_v17 = vld.sshfl [vmem:[#allocation1 + $0x8] sm:$0xff pattern:$0x75643120]  ;;  %v423_v18 = vld.sshfl [vmem:[#allocation1] sm:$0xff pattern:$0x75643120] }
  0x40   : > { %429 = vrot.lane.b32.xlu1 %v425_v17, %s804_s24  ;;  %442 = vst [vmem:[#allocation1] ss:$2 sm:$0xff] %v440_v16 }
  0x47   : > { %v445_v20 = vld.sshfl [vmem:[#allocation1 + $0x8] sm:$0xff pattern:$0x75643120]  ;;  %v443_v21 = vld.sshfl [vmem:[#allocation1] sm:$0xff pattern:$0x75643120] }
  0x48   : > { %427 = vrot.lane.b32.xlu1 %v423_v18, %s804_s24  ;;  %449 = vrot.lane.b32.xlu2 %v445_v20, %s805_s25  ;;  %463 = vst [vmem:[#allocation1 + $0x1] ss:$2 sm:$0xff] %v460_v19 }
  0x4f   : > { %v464_v23 = vld.sshfl [vmem:[#allocation1] sm:$0xff pattern:$0x75643120]  ;;  %v466_v24 = vld.sshfl [vmem:[#allocation1 + $0x8] sm:$0xff pattern:$0x75643120] }
  0x50   : > { %343 = vrot.lane.b32.xlu1 %v339_v6, %s801_s21  ;;  %468 = vrot.lane.b32.xlu0 %v464_v23, %s806_s26  ;;  %483 = vst [vmem:[#allocation1] ss:$2 sm:$0xff] %v481_v22 }
  0x51   : > { %447 = vrot.lane.b32.xlu2 %v443_v21, %s805_s25 }
  0x57   : > { %v486_v25 = vld.sshfl [vmem:[#allocation1 + $0x8] sm:$0xff pattern:$0x75643120]  ;;  %v484_v26 = vld.sshfl [vmem:[#allocation1] sm:$0xff pattern:$0x75643120] }
  0x58   : > { %490 = vrot.lane.b32.xlu0 %v486_v25, %s807_s27 }
  0x59   : > { %470 = vrot.lane.b32.xlu2 %v466_v24, %s806_s26 }
  0x60   : > { %488 = vrot.lane.b32.xlu0 %v484_v26, %s807_s27 }
  0x61   : > { %365 = vrot.lane.b32.xlu2 %v361_v8, %s802_s22  ;;  %v809_v8 = vmov 0  }
  0x62   : > { %791 = vset.pattern.permute.xlu1 %v809_v8  ;;  %792 = vset.pattern.permute.xlu0 %v809_v8 }
  0x63   : > { %515 = vperm.xlu1 %791, %v512_v5  }
  0x68   : > { %388 = vrot.lane.b32.xlu0 %v384_v12, %s808_s28 }
  0x70   : > { %386 = vrot.lane.b32.xlu0 %v382_v11, %s808_s28 }
  0x82   : > { %v368_v27 = vpop.permute.xlu2 %367 }
  0x83   : > { %377 = vst.msk [vmem:[#allocation2 + $0x14] sm:$0x3] %vm333_vm0, %v368_v27  ;;  %v370_v44 = vrot.slane %v368_v27, 4 }
  0x92   : > { %v346_v28 = vpop.permute.xlu1 %345 }
  0x93   : > { %357 = vst.msk [vmem:[#allocation2 + $0x8] sm:$0xc] %vm356_vm1, %v346_v28  ;;  %v348_v53 = vrot.slane %v346_v28, 4 }
  0x9a   : > { %v746_v20 = vld [vmem:[#allocation2 + $0x8] sm:$0xf] }
  0xa2   : > { %v450_v29 = vpop.permute.xlu2 %449 }
  0xa3   : > { %459 = vst.msk [vmem:[#allocation2 + $0x2c] sm:$0x3] %vm333_vm0, %v450_v29  ;;  %v452_v31 = vrot.slane %v450_v29, 4 }
  0xaa   : > { %v409_v30 = vpop.permute.xlu1 %408  ;;  %v407_v32 = vpop.permute.xlu0 %406 }
  0xab   : > { %v411_v33 = vrot.slane %v409_v30, 4  ;;  %418 = vst.msk [vmem:[#allocation2 + $0x20] sm:$0x3] %vm333_vm0, %v409_v30  ;;  %v448_v34 = vpop.permute.xlu2 %447  ;;  %v410_v35 = vrot.slane %v407_v32, 4 }
  0xac   : > { %v451_v36 = vrot.slane %v448_v34, 4 }
  0xad   : > { %v412_v37 = vsel %vm349_vm2, %v410_v35, %v411_v33 }
  0xae   : > { %v453_v38 = vsel %vm349_vm2, %v451_v36, %v452_v31  ;;  %v414_v39 = vsel %vm413_vm3, %v407_v32, %v412_v37  ;;  %v501_v36 = vld [vmem:[%s928_s1] sm:$0xf] }
  0xaf   : > { %v455_v40 = vsel %vm454_vm4, %v448_v34, %v453_v38  ;;  %417 = vst [vmem:[#allocation2 + $0x18] sm:$0x33] %v414_v39 }
  0xb0   : > { %458 = vst [vmem:[#allocation2 + $0x24] sm:$0x33] %v455_v40 }
  0xb2   : > { %v430_v41 = vpop.permute.xlu1 %429 }
  0xb3   : > { %439 = vst.msk [vmem:[#allocation2 + $0x20] sm:$0xc] %vm356_vm1, %v430_v41  ;;  %v471_v42 = vpop.permute.xlu2 %470  ;;  %v432_v43 = vrot.slane %v430_v41, 4 }
  0xb4   : > { %480 = vst.msk [vmem:[#allocation2 + $0x2c] sm:$0xc] %vm356_vm1, %v471_v42  ;;  %v473_v54 = vrot.slane %v471_v42, 4 }
  0xba   : > { %v428_v45 = vpop.permute.xlu1 %427  ;;  %v758_v10 = vld [vmem:[#allocation2 + $0x20] sm:$0xf] }
  0xbb   : > { %v431_v46 = vrot.slane %v428_v45, 4  ;;  %v366_v47 = vpop.permute.xlu2 %365  ;;  %v770_v12 = vld [vmem:[#allocation2 + $0x28] sm:$0xf0] }
  0xbc   : > { %v369_v48 = vrot.slane %v366_v47, 4  ;;  %v759_v14 = vor.u32 %v770_v12, %v758_v10 }
  0xbd   : > { %v433_v49 = vsel %vm349_vm2, %v431_v46, %v432_v43  ;;  %v210_v43 = vlaneseq }
  0xbe   : > { %v435_v50 = vsel %vm434_vm5, %v428_v45, %v433_v49  ;;  %v371_v51 = vsel %vm349_vm2, %v369_v48, %v370_v44 }
  0xbf   : > { %438 = vst [vmem:[#allocation2 + $0x18] sm:$0xcc] %v435_v50  ;;  %v373_v52 = vsel %vm372_vm6, %v366_v47, %v371_v51  ;;  %v893_v44 = vand.u32 127, %v210_v43 }
  0xc0   : > { %376 = vst [vmem:[#allocation2 + $0xc] sm:$0x33] %v373_v52 }
  0xc1   : > { %v896_v45 = vadd.s32 256, %v893_v44  ;;  %v899_v46 = vadd.s32 128, %v893_v44  ;;  %v217_v48 = vand.u32 65535, %v893_v44  ;;  %v218_v52 = vshrl.u32 %v893_v44, 16 }
  0xc2   : > { %v344_v55 = vpop.permute.xlu1 %343  ;;  %v469_v56 = vpop.permute.xlu0 %468 }
  0xc3   : > { %v347_v57 = vrot.slane %v344_v55, 4  ;;  %v472_v58 = vrot.slane %v469_v56, 4  ;;  %v275_v47 = vand.u32 65535, %v896_v45  ;;  %v246_v49 = vand.u32 65535, %v899_v46 }
  0xc4   : > { %v276_v50 = vshrl.u32 %v896_v45, 16 }
  0xc5   : > { %v350_v59 = vsel %vm349_vm2, %v347_v57, %v348_v53  ;;  %v474_v60 = vsel %vm349_vm2, %v472_v58, %v473_v54  ;;  %v279_v51 = vmul.u32 58254, %v275_v47  ;;  %v221_v53 = vmul.u32 58254, %v217_v48 }
  0xc6   : > { %v352_v61 = vsel %vm351_vm7, %v344_v55, %v350_v59  ;;  %v476_v62 = vsel %vm475_vm8, %v469_v56, %v474_v60  ;;  %v750_v31 = vld [vmem:[#allocation2 + $0x18] sm:$0xf]  ;;  %v768_v32 = vld [vmem:[#allocation2 + $0x1c] sm:$0xf]  ;;  %v247_v54 = vshrl.u32 %v899_v46, 16  ;;  %v278_v55 = vmul.u32 14564, %v275_v47 }
  0xc7   : > { %355 = vst [vmem:[#allocation2] sm:$0xcc] %v352_v61  ;;  %v280_v56 = vmul.u32 14564, %v276_v50  ;;  %v282_v57 = vshll.u32 %v279_v51, 16  ;;  %v220_v58 = vmul.u32 14564, %v217_v48  ;;  %v222_v59 = vmul.u32 14564, %v218_v52 }
  0xc8   : > { %479 = vst [vmem:[#allocation2 + $0x24] sm:$0xcc] %v476_v62  ;;  %v224_v60 = vshll.u32 %v221_v53, 16  ;;  %v250_v61 = vmul.u32 58254, %v246_v49  ;;  %v281_v62 = vmul.u32 58254, %v276_v50  ;;  %v252_v12 = vmul.u32 58254, %v247_v54 }
  0xc9   : > { %vm286_vm13 = vc.u32 %v278_v55, %v282_v57 }
  0xca   : > { %v491_v63 = vpop.permute.xlu0 %490  ;;  %vm228_vm14 = vc.u32 %v220_v58, %v224_v60  ;;  %v230_v5 = vadd.s32 %v224_v60, %v220_v58 }
  0xcb   : > { %500 = vst.msk [vmem:[#allocation2 + $0x38] sm:$0x3] %vm333_vm0, %v491_v63  ;;  %v493_v2 = vrot.slane %v491_v63, 4  ;;  %v284_v63 = vshll.u32 %v280_v56, 16  ;;  %v229_v10 = vsel %vm228_vm14, 1, %v809_v8 }
  0xce   : > { %v738_v37 = vld [vmem:[#allocation2] sm:$0xf]  ;;  %v765_v39 = vld [vmem:[#allocation2 + $0x4] sm:$0xf] }
  0xcf   : > { %v769_v24 = vld [vmem:[#allocation2 + $0x20] sm:$0xf0]  ;;  %v752_v29 = vld [vmem:[#allocation2 + $0x24] sm:$0xf0] }
  0xd0   : > { %v751_v34 = vor.u32 %v769_v24, %v750_v31  ;;  %v755_v35 = vor.u32 %v768_v32, %v752_v29  ;;  %v225_v24 = vshrl.u32 %v221_v53, 16  ;;  %v227_v29 = vshrl.u32 %v222_v59, 16 }
  0xd2   : > { %v489_v0 = vpop.permute.xlu0 %488  ;;  %v511_v1 = vld [vmem:[#allocation2 + $0x38] sm:$0x3] }
  0xd3   : > { %v492_v3 = vrot.slane %v489_v0, 4  ;;  %v542_v4 = vunpack.c.l.b16 %v511_v1  ;;  %v287_v1 = vsel %vm286_vm13, 1, %v809_v8 }
  0xd5   : > { %v494_v6 = vsel %vm349_vm2, %v492_v3, %v493_v2  ;;  %v551_v7 = vpack.c.b16 %v542_v4, %v542_v4  ;;  %v249_v2 = vmul.u32 14564, %v246_v49  ;;  %v251_v3 = vmul.u32 14564, %v247_v54 }
  0xd6   : > { %v496_v9 = vsel %vm495_vm9, %v489_v0, %v494_v6  ;;  %v288_v0 = vadd.s32 %v282_v57, %v278_v55  ;;  %v226_v4 = vshll.u32 %v222_v59, 16  ;;  %v253_v6 = vshll.u32 %v250_v61, 16 }
  0xd7   : > { %499 = vst [vmem:[#allocation2 + $0x30] sm:$0x33] %v496_v9  ;;  %v570_v11 = vsel %vm562_vm10, %v551_v7, 0  ;;  %v289_v7 = vadd.s32 %v287_v1, %v281_v62  ;;  %v223_v9 = vmul.u32 58254, %v218_v52  ;;  %v256_v31 = vshrl.u32 %v251_v3, 16 }
  0xd8   : > { %603 = vmatpush.bf16.msra.mxu2 %v570_v11  ;;  %vm290_vm15 = vc.u32 %v288_v0, %v284_v63  ;;  %vm257_vm0 = vc.u32 %v249_v2, %v253_v6 }
  0xd9   : > { %v291_v11 = vsel %vm290_vm15, 1, %v809_v8  ;;  %vm614_vm15 = vcmask 257024  }
  0xda   : > { %v389_v13 = vpop.permute.xlu0 %388 }
  0xdb   : > { %398 = vst.msk [vmem:[#allocation2 + $0x14] sm:$0xc] %vm356_vm1, %v389_v13  ;;  %v391_v21 = vrot.slane %v389_v13, 4  ;;  %v255_v13 = vshll.u32 %v251_v3, 16  ;;  %vm232_vm1 = vc.u32 %v230_v5, %v226_v4 }
  0xdc   : > { %604 = vmatpush.bf16.msra.mxu2 %v759_v14  ;;  %v258_v14 = vsel %vm257_vm0, 1, %v809_v8  ;;  %vm620_vm0 = vcmask 261120  }
  0xde   : > { %v510_v15 = vld [vmem:[#allocation2 + $0x30] sm:$0x33] }
  0xdf   : > { %v540_v16 = vunpack.c.l.b16 %v510_v15  ;;  %v541_v17 = vunpack.c.h.b16 %v510_v15  ;;  %v259_v15 = vadd.s32 %v253_v6, %v249_v2 }
  0xe1   : > { %v549_v18 = vpack.c.b16 %v540_v16, %v540_v16  ;;  %v550_v19 = vpack.c.b16 %v541_v17, %v541_v17  ;;  %v283_v16 = vshrl.u32 %v279_v51, 16  ;;  %v293_v17 = vadd.s32 %v291_v11, %v289_v7 }
  0xe2   : > { %v387_v22 = vpop.permute.xlu0 %386  ;;  %v767_v23 = vld [vmem:[#allocation2 + $0x10] sm:$0xf0] }
  0xe3   : > { %v390_v25 = vrot.slane %v387_v22, 4  ;;  %v564_v26 = vsel %vm562_vm10, %v549_v18, 0  ;;  %v567_v27 = vsel %vm562_vm10, %v550_v19, 0  ;;  %v747_v28 = vor.u32 %v767_v23, %v746_v20 }
  0xe4   : > { %577 = vmatpush.bf16.msra.mxu0 %v564_v26  ;;  %590 = vmatpush.bf16.msra.mxu1 %v567_v27  ;;  %v231_v18 = vadd.s32 %v229_v10, %v223_v9  ;;  %v233_v19 = vsel %vm232_vm1, 1, %v809_v8  ;;  %v260_v20 = vadd.s32 %v258_v14, %v252_v12  ;;  %v294_v23 = vadd.s32 %v293_v17, %v283_v16 }
  0xe5   : > { %v392_v30 = vsel %vm349_vm2, %v390_v25, %v391_v21  ;;  %605 = vmatpush.bf16.msra.mxu2 %v747_v28  ;;  %vm261_vm2 = vc.u32 %v259_v15, %v255_v13  ;;  %v254_v26 = vshrl.u32 %v250_v61, 16  ;;  %vm635_vm1 = vcmask 7168  }
  0xe6   : > { %v394_v33 = vsel %vm393_vm11, %v387_v22, %v392_v30  ;;  %v262_v21 = vsel %vm261_vm2, 1, %v809_v8  ;;  %v285_v22 = vshrl.u32 %v280_v56, 16  ;;  %v235_v25 = vadd.s32 %v233_v19, %v231_v18 }
  0xe7   : > { %397 = vst [vmem:[#allocation2 + $0xc] sm:$0xcc] %v394_v33  ;;  %v264_v27 = vadd.s32 %v262_v21, %v260_v20  ;;  %vm637_vm2 = vcmask 15368  }
  0xe8   : > { %578 = vmatpush.bf16.msra.mxu0 %v751_v34  ;;  %591 = vmatpush.bf16.msra.mxu1 %v755_v35  ;;  %v295_v28 = vadd.s32 %v294_v23, %v285_v22  ;;  %v236_v30 = vadd.s32 %v235_v25, %v225_v24 }
  0xe9   : > { %762 = vmatmul.msk.bf16.vlgmr.msra.gmra.mxu2 %vm558_vm12, %v501_v36  ;;  %v265_v32 = vadd.s32 %v264_v27, %v254_v26 }
  0xea   : > { %v296_v33 = vshrl.u32 %v295_v28, 4  ;;  %v237_v34 = vadd.s32 %v236_v30, %v227_v29 }
  0xeb   : > { %v266_v35 = vadd.s32 %v265_v32, %v256_v31 }
  0xee   : > { %v766_v38 = vld [vmem:[#allocation2 + $0x8] sm:$0xf0]  ;;  %v740_v40 = vld [vmem:[#allocation2 + $0xc] sm:$0xf0] }
  0xef   : > { %v739_v41 = vor.u32 %v766_v38, %v738_v37  ;;  %v743_v42 = vor.u32 %v765_v39, %v740_v40  ;;  %v238_v37 = vshrl.u32 %v237_v34, 4  ;;  %v267_v38 = vshrl.u32 %v266_v35, 4 }
  0xf1   : > { %579 = vmatpush.bf16.msra.mxu0 %v739_v41  ;;  %592 = vmatpush.bf16.msra.mxu1 %v743_v42  ;;  %v239_v8 = vmul.u32 18, %v238_v37  ;;  %v268_v40 = vmul.u32 18, %v267_v38 }
  0xf3   : > { %v240_v41 = vsub.s32 %v893_v44, %v239_v8  ;;  %v269_v42 = vsub.s32 %v899_v46, %v268_v40  ;;  %v810_v44 = vmov 0.0  }
  0xf4   : > { %760 = vmatmul.msk.bf16.vlgmr.msra.gmra.mxu0 %vm558_vm12, %v501_v36  ;;  %761 = vmatmul.msk.bf16.vlgmr.msra.gmra.mxu1 %vm558_vm12, %v501_v36  ;;  %v297_v36 = vmul.u32 18, %v296_v33 }
  0xf5   : > { %vm301_vm6 = vcmp.ne.s32.totalorder %v240_v41, 0  ;;  %vm304_vm7 = vcmp.lt.s32.totalorder %v240_v41, 0  ;;  %vm302_vm8 = vcmp.ne.s32.totalorder %v269_v42, 0  ;;  %vm305_vm9 = vcmp.lt.s32.totalorder %v269_v42, 0 }
  0xf6   : > { %v298_v39 = vsub.s32 %v896_v45, %v297_v36  ;;  %vm307_vm10 = vmand %vm304_vm7, %vm301_vm6  ;;  %v310_v48 = vadd.s32 18, %v240_v41  ;;  %v311_v49 = vadd.s32 18, %v269_v42  ;;  %v516_v45 = vpop.permute.xlu1 %515 }
  0xf7   : > { %vm308_vm11 = vmand %vm305_vm9, %vm302_vm8 }
  0xf8   : > { %vm303_vm3 = vcmp.ne.s32.totalorder %v298_v39, 0  ;;  %vm306_vm4 = vcmp.lt.s32.totalorder %v298_v39, 0  ;;  %v312_v43 = vadd.s32 18, %v298_v39  ;;  %v313_v50 = vsel %vm307_vm10, %v310_v48, %v240_v41 }
  0xf9   : > { %vm309_vm5 = vmand %vm306_vm4, %vm303_vm3  ;;  %v314_v51 = vsel %vm308_vm11, %v311_v49, %v269_v42  ;;  %vm316_vm13 = vcmp.lt.s32.totalorder %v313_v50, 16 }
  0xfa   : > { %v315_v47 = vsel %vm309_vm5, %v312_v43, %v298_v39  ;;  %vm317_vm14 = vcmp.lt.s32.totalorder %v314_v51, 16  ;;  %v733_v56 = vsel %vm316_vm13, 1.0, %v810_v44 }
  0xfb   : > { %vm318_vm12 = vcmp.lt.s32.totalorder %v315_v47, 16  ;;  %v734_v58 = vsel %vm317_vm14, 1.0, %v810_v44 }
  0xfc   : > { %v735_v53 = vsel %vm318_vm12, 1.0, %v810_v44 }
 0x16c   : > { %v607_v52 = vpop.f32.mrf.mxu2 }
 0x16d   : > { %v608_v46 = vadd.f32 %v607_v52, %v516_v45 }
 0x16f   : > { %v612_v54 = vpack.c.bf16 %v608_v46, %v608_v46  ;;  %v618_v55 = vmul.f32 %v735_v53, %v608_v46 }
 0x171   : > { %v581_v57 = vpop.f32.mrf.mxu0  ;;  %v594_v59 = vpop.f32.mrf.mxu1  ;;  %615 = vst.msk [vmem:[%s204_s10 + $0x8] sm:$0xf] %vm614_vm15, %v612_v54  ;;  %v628_v62 = vmul.f32 %v618_v55, %v618_v55  ;;  %v621_v3 = vsel %vm620_vm0, %v618_v55, 0.0 }
 0x172   : > { %v582_v60 = vadd.f32 %v581_v57, %v516_v45  ;;  %v595_v61 = vadd.f32 %v594_v59, %v516_v45 }
 0x173   : > { %v630_v7 = vsel %vm620_vm0, %v628_v62, 0.0 }
 0x174   : > { %v616_v63 = vmul.f32 %v733_v56, %v582_v60  ;;  %v611_v0 = vpack.c.bf16 %v595_v61, %v582_v60  ;;  %v617_v1 = vmul.f32 %v734_v58, %v595_v61  ;;  %v609_v2 = vpop.f32.mrf.mxu2 }
 0x176   : > { %v626_v4 = vmul.f32 %v616_v63, %v616_v63  ;;  %613 = vst [vmem:[%s204_s10] sm:$0xff] %v611_v0  ;;  %v627_v5 = vmul.f32 %v617_v1, %v617_v1  ;;  %v619_v6 = vadd.f32 %v617_v1, %v616_v63 }
 0x178   : > { %v622_v9 = vadd.f32 %v621_v3, %v619_v6  ;;  %v629_v10 = vadd.f32 %v627_v5, %v626_v4 }
 0x179   : > { %v583_v11 = vpop.f32.mrf.mxu0  ;;  %v596_v12 = vpop.f32.mrf.mxu1 }
 0x17a   : > { %623 = vadd.xlane.f32.xlu2 %v622_v9  ;;  %v631_v13 = vadd.f32 %v630_v7, %v629_v10 }
 0x17c   : > { %632 = vadd.xlane.f32.xlu0 %v631_v13 }
 0x1ed   : > { %v624_v14 = vpop.xlane.xlu2 %623 }
 0x1ee   : > { %636 = vst.msk [vmem:[%s208_s14] sm:$0xff] %vm635_vm1, %v624_v14 }
 0x1ef   : > { %v633_v15 = vpop.xlane.xlu0 %632 }
 0x1f0   : > { %638 = vst.msk [vmem:[%s208_s14] sm:$0xff] %vm637_vm2, %v633_v15 }
 0x1f1 PF: > { %s15_s15 = sadd.s32 1, %s799_s15  }
 0x1f2   : > { %p12_p4 = scmp.ge.s32.totalorder %s15_s15, 4  }
 0x1f4   :  { %14 = sbr.rel (!%p12_p4) target bundleno = 1 (0x1), region = 78 }

</bundles_post_ra>
